<compile_context>
chip_gen: v5e
topology: v5e:2x2
jax: 0.10.0
libtpu: 0.0.40
codegen_flags: <defaults>
</compile_context>

<pallas_src>
import jax
import jax.numpy as jnp
from jax.experimental import pallas as pl
from jax.experimental.pallas import tpu as pltpu

IN_FEATURES = 4
N_HIDDEN = 256
N_ACTIONS = 2
HEAD_LANES = 128   # lane-dense fused-head width for the MXU matmul
OUT_LANES = 8      # narrow f32 output slab: lanes 0-1 = probs, lane 2 = value


def policy_kernel(x_ref, w1_ref, b1_ref, w2_ref, b2_ref, wh_ref, bh_ref, out_ref):
    tb = x_ref.shape[0]
    x = x_ref[...]                                     # (tb, 4) f32

    # ---- layer 1 on the VPU: K=4 is <2% of MXU systolic depth, so compute
    #      h1 = relu(b1 + sum_k x[:, k] * w1[k, :]) as 4 broadcast FMAs (f32).
    w1 = w1_ref[...]                                   # (4, 256) f32
    h1 = jnp.broadcast_to(b1_ref[...], (tb, N_HIDDEN))
    for k in range(IN_FEATURES):                       # static, fully unrolled
        h1 = h1 + x[:, k:k + 1] * w1[k:k + 1, :]
    h1 = jnp.maximum(h1, 0.0)                          # (tb, 256) f32

    # ---- layer 2 (dominant matmul): bf16 inputs, f32 accumulation on MXU ----
    h2 = jnp.dot(h1.astype(jnp.bfloat16), w2_ref[...],
                 preferred_element_type=jnp.float32)
    h2 = jnp.maximum(h2 + b2_ref[...], 0.0)            # (tb, 256) f32

    # ---- fused action + value head: one (256, 128) bf16 matmul ----
    # lanes 0-1 = action logits, lane 2 = value, lanes 3+ = exactly 0
    logits = jnp.dot(h2.astype(jnp.bfloat16), wh_ref[...],
                     preferred_element_type=jnp.float32)
    logits = logits + bh_ref[...]                      # (tb, 128) f32

    # ---- exact softmax restricted to the two action lanes ----
    lane = jax.lax.broadcasted_iota(jnp.int32, logits.shape, 1)
    is_action = lane < N_ACTIONS
    masked = jnp.where(is_action, logits, -jnp.inf)
    m = jnp.max(masked, axis=-1, keepdims=True)
    e = jnp.where(is_action, jnp.exp(masked - m), 0.0)
    denom = jnp.sum(e, axis=-1, keepdims=True)
    probs = e / denom                                  # exact: rows sum to 1

    # narrow output slab: lanes 0-1 probs, lane 2 value, lanes 3-7 zero
    res = jnp.where(is_action, probs, logits)          # (tb, 128)
    out_ref[...] = res[:, :OUT_LANES]                  # (tb, 8) store


def _round_up(n, m):
    return (n + m - 1) // m * m


def _cdiv(a, b):
    return -(-a // b)


def policy_forward(x, packed, block_b=2048, min_rows_per_core=512):
    """x: (B, 4) float32. packed: dict from pack_params(). Returns (probs, values)."""
    B = x.shape[0]

    # Balanced batch tiles: as few grid steps as block_b allows, then even-size
    # tiles so the last tile is not mostly padding.
    n_steps = _cdiv(B, block_b)
    # v7x has 2 TensorCores; give the "parallel" batch axis an even number of
    # >= 2 grid steps when the batch is big enough that the split isn't pure
    # per-step overhead.  On v5e/v6e (1 TC) the extra step is negligible.
    if B >= 2 * min_rows_per_core and n_steps % 2 == 1:
        n_steps += 1
    tb = _round_up(_cdiv(B, n_steps), 8)        # f32 sublane multiple
    b_pad = _round_up(B, tb)
    if b_pad != B:
        x = jnp.pad(x, ((0, b_pad - B), (0, 0)))

    const = lambda i: (0, 0)                    # weights/biases grid-invariant
    out = pl.pallas_call(
        policy_kernel,
        out_shape=jax.ShapeDtypeStruct((b_pad, OUT_LANES), jnp.float32),
        grid_spec=pltpu.PrefetchScalarGridSpec(
            num_scalar_prefetch=0,
            grid=(b_pad // tb,),
            in_specs=[
                pl.BlockSpec((tb, IN_FEATURES), lambda i: (i, 0)),   # x tile (streams)
                pl.BlockSpec((IN_FEATURES, N_HIDDEN), const),        # w1 (f32, VPU layer)
                pl.BlockSpec((1, N_HIDDEN), const),                  # b1 (f32)
                pl.BlockSpec((N_HIDDEN, N_HIDDEN), const),           # w2 (bf16)
                pl.BlockSpec((1, N_HIDDEN), const),                  # b2 (f32)
                pl.BlockSpec((N_HIDDEN, HEAD_LANES), const),         # fused head W (bf16)
                pl.BlockSpec((1, HEAD_LANES), const),                # fused head b (f32)
            ],
            out_specs=pl.BlockSpec((tb, OUT_LANES), lambda i: (i, 0)),
        ),
        compiler_params=pltpu.CompilerParams(
            dimension_semantics=("parallel",),      # shard batch axis over TCs (v7x)
            vmem_limit_bytes=32 * 1024 * 1024),
    )(x, packed["w1"], packed["b1"], packed["w2"], packed["b2"],
      packed["wh"], packed["bh"])

    action_prob = out[:B, :N_ACTIONS]
    state_value = out[:B, N_ACTIONS:N_ACTIONS + 1]
    return action_prob, state_value


def init_params(key):
    """Deterministic init mimicking nn.Linear (uniform(-1/sqrt(fan_in), +));
    weights stored transposed as (in_features, out_features)."""
    def linear(key, fan_in, fan_out):
        kw, kb = jax.random.split(key)
        bound = 1.0 / jnp.sqrt(jnp.float32(fan_in))
        w = jax.random.uniform(kw, (fan_in, fan_out), jnp.float32, -bound, bound)
        b = jax.random.uniform(kb, (1, fan_out), jnp.float32, -bound, bound)
        return w, b

    k1, k2, k3, k4 = jax.random.split(key, 4)
    w1, b1 = linear(k1, IN_FEATURES, N_HIDDEN)
    w2, b2 = linear(k2, N_HIDDEN, N_HIDDEN)
    wa, ba = linear(k3, N_HIDDEN, N_ACTIONS)
    wv, bv = linear(k4, N_HIDDEN, 1)
    return {"w1": w1, "b1": b1, "w2": w2, "b2": b2,
            "wa": wa, "ba": ba, "wv": wv, "bv": bv}


def pack_params(p):
    """Fuse action/value heads into one zero-padded lane-dense weight.
    Zero-padding of lanes 3+ (weights AND bias) is a kernel invariant."""
    wh = jnp.zeros((N_HIDDEN, HEAD_LANES), jnp.float32)
    wh = wh.at[:, :N_ACTIONS].set(p["wa"]).at[:, N_ACTIONS:N_ACTIONS + 1].set(p["wv"])
    bh = jnp.zeros((1, HEAD_LANES), jnp.float32)
    bh = bh.at[:, :N_ACTIONS].set(p["ba"]).at[:, N_ACTIONS:N_ACTIONS + 1].set(p["bv"])
    return {
        "w1": p["w1"], "b1": p["b1"],                       # layer 1 stays f32 (VPU)
        "w2": p["w2"].astype(jnp.bfloat16), "b2": p["b2"],
        "wh": wh.astype(jnp.bfloat16), "bh": bh,
    }


def reference_forward_f32(x, p):
    """Pure f32 reference (matches the PyTorch module's math)."""
    h1 = jnp.maximum(x @ p["w1"] + p["b1"], 0.0)
    h2 = jnp.maximum(h1 @ p["w2"] + p["b2"], 0.0)
    prob = jax.nn.softmax(h2 @ p["wa"] + p["ba"], axis=-1)
    value = h2 @ p["wv"] + p["bv"]
    return prob, value


def reference_forward_packed(x, packed):
    """Mirrors the kernel's numerics: exact-f32 layer 1, bf16-in/f32-acc after."""
    h1 = jnp.maximum(
        jnp.dot(x, packed["w1"], precision=jax.lax.Precision.HIGHEST)
        + packed["b1"], 0.0)
    h2 = jnp.maximum(
        jnp.dot(h1.astype(jnp.bfloat16), packed["w2"],
                preferred_element_type=jnp.float32) + packed["b2"], 0.0)
    logits = jnp.dot(h2.astype(jnp.bfloat16), packed["wh"],
                     preferred_element_type=jnp.float32) + packed["bh"]
    prob = jax.nn.softmax(logits[:, :N_ACTIONS], axis=-1)
    value = logits[:, N_ACTIONS:N_ACTIONS + 1]
    return prob, value


if __name__ == "__main__":
    key = jax.random.PRNGKey(0)
    k_params, k_x1, k_x2, k_x3 = jax.random.split(key, 4)
    params = init_params(k_params)
    packed = pack_params(params)

    # small batch (CartPole-style: 4 features)
    B = 8
    x = jax.random.normal(k_x1, (B, IN_FEATURES), jnp.float32)
    prob, value = policy_forward(x, packed)
    jax.block_until_ready((prob, value))

    ref_p, ref_v = reference_forward_packed(x, packed)
    f32_p, f32_v = reference_forward_f32(x, params)
    assert prob.shape == (B, N_ACTIONS) and value.shape == (B, 1)
    assert jnp.allclose(prob, ref_p, atol=2e-3, rtol=2e-3)
    assert jnp.allclose(value, ref_v, atol=2e-3, rtol=2e-3)
    assert jnp.allclose(prob, f32_p, atol=5e-2)          # vs full-f32 module math
    assert jnp.allclose(value, f32_v, atol=5e-2)
    assert jnp.allclose(jnp.sum(prob, axis=-1), 1.0, atol=1e-4)   # exact softmax

    # non-aligned batch: single balanced tile, no pad-to-512 blow-up
    B2 = 300
    x2 = jax.random.normal(k_x2, (B2, IN_FEATURES), jnp.float32)
    prob2, value2 = policy_forward(x2, packed)
    jax.block_until_ready((prob2, value2))
    ref_p2, ref_v2 = reference_forward_packed(x2, packed)
    assert prob2.shape == (B2, N_ACTIONS) and value2.shape == (B2, 1)
    assert jnp.allclose(prob2, ref_p2, atol=2e-3, rtol=2e-3)
    assert jnp.allclose(value2, ref_v2, atol=2e-3, rtol=2e-3)
    assert jnp.allclose(jnp.sum(prob2, axis=-1), 1.0, atol=1e-4)

    # batch large enough to exercise the multi-step (dual-TensorCore) grid path
    B3 = 1100
    x3 = jax.random.normal(k_x3, (B3, IN_FEATURES), jnp.float32)
    prob3, value3 = policy_forward(x3, packed)
    jax.block_until_ready((prob3, value3))
    ref_p3, ref_v3 = reference_forward_packed(x3, packed)
    assert prob3.shape == (B3, N_ACTIONS) and value3.shape == (B3, 1)
    assert jnp.allclose(prob3, ref_p3, atol=2e-3, rtol=2e-3)
    assert jnp.allclose(value3, ref_v3, atol=2e-3, rtol=2e-3)
    assert jnp.allclose(jnp.sum(prob3, axis=-1), 1.0, atol=1e-4)

    print("KERNEL_OK")
</pallas_src>

<mosaic_0001>
module attributes {stable_mosaic.version = 11 : i64} {
  func.func @policy_kernel(%arg0: i32, %arg1: memref<8x4xf32, #tpu.memory_space<vmem>>, %arg2: memref<4x256xf32, #tpu.memory_space<vmem>>, %arg3: memref<1x256xf32, #tpu.memory_space<vmem>>, %arg4: memref<256x256xbf16, #tpu.memory_space<vmem>>, %arg5: memref<1x256xf32, #tpu.memory_space<vmem>>, %arg6: memref<256x128xbf16, #tpu.memory_space<vmem>>, %arg7: memref<1x128xf32, #tpu.memory_space<vmem>>, %arg8: memref<8x8xf32, #tpu.memory_space<vmem>>) attributes {dimension_semantics = [#tpu.dimension_semantics<parallel>], iteration_bounds = array<i64: 1>, scalar_prefetch = 0 : i64, scratch_operands = 0 : i64, tpu.core_type = #tpu.core_type<tc>, window_params = [{transform_indices = @transform_0, window_bounds = array<i64: 8, 4>}, {pipeline_mode = #tpu.pipeline_mode<synchronous>, transform_indices = @transform_1, window_bounds = array<i64: 4, 256>}, {pipeline_mode = #tpu.pipeline_mode<synchronous>, transform_indices = @transform_2, window_bounds = array<i64: 1, 256>}, {pipeline_mode = #tpu.pipeline_mode<synchronous>, transform_indices = @transform_3, window_bounds = array<i64: 256, 256>}, {pipeline_mode = #tpu.pipeline_mode<synchronous>, transform_indices = @transform_4, window_bounds = array<i64: 1, 256>}, {pipeline_mode = #tpu.pipeline_mode<synchronous>, transform_indices = @transform_5, window_bounds = array<i64: 256, 128>}, {pipeline_mode = #tpu.pipeline_mode<synchronous>, transform_indices = @transform_6, window_bounds = array<i64: 1, 128>}, {transform_indices = @transform_7, window_bounds = array<i64: 8, 8>}]} {
    %c0 = arith.constant 0 : index
    %c0_0 = arith.constant 0 : index
    %0 = vector.load %arg1[%c0, %c0_0] : memref<8x4xf32, #tpu.memory_space<vmem>>, vector<8x4xf32>
    %c0_1 = arith.constant 0 : index
    %c0_2 = arith.constant 0 : index
    %1 = vector.load %arg2[%c0_1, %c0_2] : memref<4x256xf32, #tpu.memory_space<vmem>>, vector<4x256xf32>
    %c0_3 = arith.constant 0 : index
    %c0_4 = arith.constant 0 : index
    %2 = vector.load %arg3[%c0_3, %c0_4] : memref<1x256xf32, #tpu.memory_space<vmem>>, vector<1x256xf32>
    %3 = vector.shape_cast %2 : vector<1x256xf32> to vector<1x256xf32>
    %4 = vector.broadcast %3 : vector<1x256xf32> to vector<8x256xf32>
    %5 = vector.extract_strided_slice %0 {offsets = [0, 0], sizes = [8, 1], strides = [1, 1]} : vector<8x4xf32> to vector<8x1xf32>
    %6 = vector.extract_strided_slice %1 {offsets = [0, 0], sizes = [1, 256], strides = [1, 1]} : vector<4x256xf32> to vector<1x256xf32>
    %7 = vector.broadcast %5 : vector<8x1xf32> to vector<8x256xf32>
    %8 = vector.broadcast %6 : vector<1x256xf32> to vector<8x256xf32>
    %9 = arith.mulf %7, %8 : vector<8x256xf32>
    %10 = arith.addf %4, %9 : vector<8x256xf32>
    %11 = vector.extract_strided_slice %0 {offsets = [0, 1], sizes = [8, 1], strides = [1, 1]} : vector<8x4xf32> to vector<8x1xf32>
    %12 = vector.extract_strided_slice %1 {offsets = [1, 0], sizes = [1, 256], strides = [1, 1]} : vector<4x256xf32> to vector<1x256xf32>
    %13 = vector.broadcast %11 : vector<8x1xf32> to vector<8x256xf32>
    %14 = vector.broadcast %12 : vector<1x256xf32> to vector<8x256xf32>
    %15 = arith.mulf %13, %14 : vector<8x256xf32>
    %16 = arith.addf %10, %15 : vector<8x256xf32>
    %17 = vector.extract_strided_slice %0 {offsets = [0, 2], sizes = [8, 1], strides = [1, 1]} : vector<8x4xf32> to vector<8x1xf32>
    %18 = vector.extract_strided_slice %1 {offsets = [2, 0], sizes = [1, 256], strides = [1, 1]} : vector<4x256xf32> to vector<1x256xf32>
    %19 = vector.broadcast %17 : vector<8x1xf32> to vector<8x256xf32>
    %20 = vector.broadcast %18 : vector<1x256xf32> to vector<8x256xf32>
    %21 = arith.mulf %19, %20 : vector<8x256xf32>
    %22 = arith.addf %16, %21 : vector<8x256xf32>
    %23 = vector.extract_strided_slice %0 {offsets = [0, 3], sizes = [8, 1], strides = [1, 1]} : vector<8x4xf32> to vector<8x1xf32>
    %24 = vector.extract_strided_slice %1 {offsets = [3, 0], sizes = [1, 256], strides = [1, 1]} : vector<4x256xf32> to vector<1x256xf32>
    %25 = vector.broadcast %23 : vector<8x1xf32> to vector<8x256xf32>
    %26 = vector.broadcast %24 : vector<1x256xf32> to vector<8x256xf32>
    %27 = arith.mulf %25, %26 : vector<8x256xf32>
    %28 = arith.addf %22, %27 : vector<8x256xf32>
    %cst = arith.constant 0.000000e+00 : f32
    %29 = vector.broadcast %cst : f32 to vector<8x256xf32>
    %30 = arith.maximumf %28, %29 : vector<8x256xf32>
    %31 = arith.truncf %30 : vector<8x256xf32> to vector<8x256xbf16>
    %c0_5 = arith.constant 0 : index
    %c0_6 = arith.constant 0 : index
    %32 = vector.load %arg4[%c0_5, %c0_6] : memref<256x256xbf16, #tpu.memory_space<vmem>>, vector<256x256xbf16>
    %cst_7 = arith.constant dense<0.000000e+00> : vector<8x256xf32>
    %33 = tpu.matmul %31, %32, %cst_7 {dimension_numbers = #tpu.dot_dimension_numbers<[1], [0], [0], [1], [0, 0, 1, 1], [], []>} : vector<8x256xbf16>, vector<256x256xbf16>, vector<8x256xf32> -> vector<8x256xf32>
    %c0_8 = arith.constant 0 : index
    %c0_9 = arith.constant 0 : index
    %34 = vector.load %arg5[%c0_8, %c0_9] : memref<1x256xf32, #tpu.memory_space<vmem>>, vector<1x256xf32>
    %35 = vector.broadcast %34 : vector<1x256xf32> to vector<8x256xf32>
    %36 = arith.addf %33, %35 : vector<8x256xf32>
    %cst_10 = arith.constant 0.000000e+00 : f32
    %37 = vector.broadcast %cst_10 : f32 to vector<8x256xf32>
    %38 = arith.maximumf %36, %37 : vector<8x256xf32>
    %39 = arith.truncf %38 : vector<8x256xf32> to vector<8x256xbf16>
    %c0_11 = arith.constant 0 : index
    %c0_12 = arith.constant 0 : index
    %40 = vector.load %arg6[%c0_11, %c0_12] : memref<256x128xbf16, #tpu.memory_space<vmem>>, vector<256x128xbf16>
    %cst_13 = arith.constant dense<0.000000e+00> : vector<8x128xf32>
    %41 = tpu.matmul %39, %40, %cst_13 {dimension_numbers = #tpu.dot_dimension_numbers<[1], [0], [0], [1], [0, 0, 1, 1], [], []>} : vector<8x256xbf16>, vector<256x128xbf16>, vector<8x128xf32> -> vector<8x128xf32>
    %c0_14 = arith.constant 0 : index
    %c0_15 = arith.constant 0 : index
    %42 = vector.load %arg7[%c0_14, %c0_15] : memref<1x128xf32, #tpu.memory_space<vmem>>, vector<1x128xf32>
    %43 = vector.broadcast %42 : vector<1x128xf32> to vector<8x128xf32>
    %44 = arith.addf %41, %43 : vector<8x128xf32>
    %45 = tpu.iota {dimensions = array<i32: 1>} : vector<8x128xi32>
    %c2_i32 = arith.constant 2 : i32
    %46 = vector.broadcast %c2_i32 : i32 to vector<8x128xi32>
    %47 = arith.cmpi slt, %45, %46 : vector<8x128xi32>
    %cst_16 = arith.constant 0xFF800000 : f32
    %48 = vector.broadcast %cst_16 : f32 to vector<8x128xf32>
    %49 = arith.select %47, %44, %48 : vector<8x128xi1>, vector<8x128xf32>
    %cst_17 = arith.constant dense<0xFF800000> : vector<8xf32>
    %50 = vector.multi_reduction <maximumf>, %49, %cst_17 [1] : vector<8x128xf32> to vector<8xf32>
    %51 = vector.shape_cast %50 : vector<8xf32> to vector<8x1xf32>
    %52 = vector.broadcast %51 : vector<8x1xf32> to vector<8x128xf32>
    %53 = arith.subf %49, %52 : vector<8x128xf32>
    %54 = math.exp %53 : vector<8x128xf32>
    %cst_18 = arith.constant 0.000000e+00 : f32
    %55 = vector.broadcast %cst_18 : f32 to vector<8x128xf32>
    %56 = arith.select %47, %54, %55 : vector<8x128xi1>, vector<8x128xf32>
    %cst_19 = arith.constant dense<0.000000e+00> : vector<8xf32>
    %57 = vector.multi_reduction <add>, %56, %cst_19 [1] : vector<8x128xf32> to vector<8xf32>
    %58 = vector.shape_cast %57 : vector<8xf32> to vector<8x1xf32>
    %59 = vector.broadcast %58 : vector<8x1xf32> to vector<8x128xf32>
    %60 = arith.divf %56, %59 : vector<8x128xf32>
    %61 = arith.select %47, %60, %44 : vector<8x128xi1>, vector<8x128xf32>
    %62 = vector.extract_strided_slice %61 {offsets = [0, 0], sizes = [8, 8], strides = [1, 1]} : vector<8x128xf32> to vector<8x8xf32>
    %c0_20 = arith.constant 0 : index
    %c0_21 = arith.constant 0 : index
    %63 = vector.load %arg8[%c0_20, %c0_21] : memref<8x8xf32, #tpu.memory_space<vmem>>, vector<8x8xf32>
    tpu.vector_store %arg8[%c0_20, %c0_21], %62 {strides = array<i32>} : memref<8x8xf32, #tpu.memory_space<vmem>>, vector<8x8xf32>,
    return
  }
  func.func @transform_0(%arg0: i32) -> (i32, i32) {
    %c0_i32 = arith.constant 0 : i32
    %c0_i32_0 = arith.constant 0 : i32
    return %arg0, %c0_i32 : i32, i32
  }
  func.func @transform_1(%arg0: i32) -> (i32, i32) {
    %c0_i32 = arith.constant 0 : i32
    %c0_i32_0 = arith.constant 0 : i32
    %c0_i32_1 = arith.constant 0 : i32
    return %c0_i32, %c0_i32_0 : i32, i32
  }
  func.func @transform_2(%arg0: i32) -> (i32, i32) {
    %c0_i32 = arith.constant 0 : i32
    %c0_i32_0 = arith.constant 0 : i32
    %c0_i32_1 = arith.constant 0 : i32
    return %c0_i32, %c0_i32_0 : i32, i32
  }
  func.func @transform_3(%arg0: i32) -> (i32, i32) {
    %c0_i32 = arith.constant 0 : i32
    %c0_i32_0 = arith.constant 0 : i32
    %c0_i32_1 = arith.constant 0 : i32
    return %c0_i32, %c0_i32_0 : i32, i32
  }
  func.func @transform_4(%arg0: i32) -> (i32, i32) {
    %c0_i32 = arith.constant 0 : i32
    %c0_i32_0 = arith.constant 0 : i32
    %c0_i32_1 = arith.constant 0 : i32
    return %c0_i32, %c0_i32_0 : i32, i32
  }
  func.func @transform_5(%arg0: i32) -> (i32, i32) {
    %c0_i32 = arith.constant 0 : i32
    %c0_i32_0 = arith.constant 0 : i32
    %c0_i32_1 = arith.constant 0 : i32
    return %c0_i32, %c0_i32_0 : i32, i32
  }
  func.func @transform_6(%arg0: i32) -> (i32, i32) {
    %c0_i32 = arith.constant 0 : i32
    %c0_i32_0 = arith.constant 0 : i32
    %c0_i32_1 = arith.constant 0 : i32
    return %c0_i32, %c0_i32_0 : i32, i32
  }
  func.func @transform_7(%arg0: i32) -> (i32, i32) {
    %c0_i32 = arith.constant 0 : i32
    %c0_i32_0 = arith.constant 0 : i32
    return %arg0, %c0_i32 : i32, i32
  }
}

</mosaic_0001>

<bundles_post_ra>
// kernel: tpu_custom_call.1
= control target key start
LH: loop header
LB: loop body
LE: loop exit
PB: predicated region body
PF: predicated region fallthrough
CT: control target
= control target key end

     0   :  { %12 = vsyncpa [#allocation3], 0  ;;  %s1006_s0 = inlined_call_operand.vmem [shape: f32[8,4], index: 0, kind: input, shape index: {}]   ;;  %s1007_s1 = inlined_call_operand.vmem [shape: f32[4,256], index: 1, kind: input, shape index: {}]   ;;  %s1008_s2 = inlined_call_operand.vmem [shape: f32[1,256], index: 2, kind: input, shape index: {}]   ;;  %s1009_s3 = inlined_call_operand.hbm [shape: bf16[256,256], index: 3, kind: input, shape index: {}]   ;;  %s1010_s4 = inlined_call_operand.vmem [shape: f32[1,256], index: 4, kind: input, shape index: {}]   ;;  %s1011_s5 = inlined_call_operand.hbm [shape: bf16[256,128], index: 5, kind: input, shape index: {}]   ;;  %s1012_s6 = inlined_call_operand.vmem [shape: f32[1,128], index: 6, kind: input, shape index: {}]   ;;  %s1013_s7 = inlined_call_operand.hbm [shape: f32[8,8], index: 7, kind: output, shape index: {}]  }
   0x1   :  { %13 = vsyncpa [#allocation6], 0 }
   0x2   :  { %14 = vsyncpa [#allocation4], 0  ;;  %s25_s26 = sshll.u32 %s1009_s3, 4  ;;  %s928_s27 = smov [#allocation2]   ;;  %s26_s26 = int_to_ptr.hbm [resolvable:$true] %s25_s26 }
   0x3   :  { %s27_s28 = sshll.u32 %s928_s27, 4  ;;  %s40_s8 = sshll.u32 %s1011_s5, 4  ;;  %s28_s28 = int_to_ptr.vmem [resolvable:$true] %s27_s28  ;;  %s41_s8 = int_to_ptr.hbm [resolvable:$true] %s40_s8 }
   0x4   :  { %s929_s9 = smov 128   ;;  %s930_s10 = smov 8  }
   0x5   :  { %33 = dma.hbm_to_vmem [thread:$0]  %s26_s26, 4096, %s28_s28, [#allocation3], %s929_s9, %s929_s9, %s930_s10  }
   0x6   :  { %s931_s11 = smov [#allocation5]   ;;  %s932_s13 = smov 64  }
   0x7   :  { %s42_s12 = sshll.u32 %s931_s11, 4  ;;  %s933_s14 = smov 4   ;;  %s43_s12 = int_to_ptr.vmem [resolvable:$true] %s42_s12 }
   0x8   :  { %48 = dma.hbm_to_vmem [thread:$0]  %s41_s8, 2048, %s43_s12, [#allocation6], %s932_s13, %s932_s13, %s933_s14  }
   0x9   :  { %922 = dma.done.wait [#allocation3], 4096  }
   0xa   :  { %923 = vsyncadd [#allocation3], 4294963200 }
   0xb   :  { %924 = dma.done.wait [#allocation6], 2048  }
   0xc   :  { %925 = vsyncadd [#allocation6], 4294965248  ;;  %v934_v0 = vmov 0   ;;  %v935_v1 = vmov 2   ;;  %v59_v2 = vld [vmem:[%s1006_s0] sm:$0xff]  ;;  %v936_v37 = vmov 1  }
   0xd   :  { %840 = vset.pattern.permute.xlu0 %v934_v0  ;;  %842 = vset.pattern.permute.xlu1 %v935_v1  ;;  %v647_v3 = vld [vmem:[#allocation2 + $0x70] sm:$0xf]  ;;  %v796_v4 = vld [vmem:[#allocation2 + $0x74] sm:$0xf0]  ;;  %v795_v8 = vld [vmem:[#allocation2 + $0x74] sm:$0xf] }
   0xe   :  { %69 = vperm.xlu0 %840, %v59_v2   ;;  %98 = vperm.xlu1 %842, %v59_v2   ;;  %v648_v5 = vor.u32 %v796_v4, %v647_v3  ;;  %v711_v6 = vld [vmem:[#allocation2 + $0xf0] sm:$0xf]  ;;  %v812_v7 = vld [vmem:[#allocation2 + $0xf4] sm:$0xf0]  ;;  %v649_v10 = vld [vmem:[#allocation2 + $0x78] sm:$0xf0] }
   0xf   :  { %v712_v9 = vor.u32 %v812_v7, %v711_v6  ;;  %v811_v11 = vld [vmem:[#allocation2 + $0xf4] sm:$0xf]  ;;  %v713_v12 = vld [vmem:[#allocation2 + $0xf8] sm:$0xf0]  ;;  %v652_v13 = vor.u32 %v795_v8, %v649_v10  ;;  %v639_v15 = vld [vmem:[#allocation2 + $0x60] sm:$0xf] }
  0x10   :  { %327 = vmatpush.bf16.msra.mxu0 %v648_v5  ;;  %v716_v14 = vor.u32 %v811_v11, %v713_v12  ;;  %v794_v16 = vld [vmem:[#allocation2 + $0x64] sm:$0xf0]  ;;  %v703_v17 = vld [vmem:[#allocation2 + $0xe0] sm:$0xf]  ;;  %v793_v20 = vld [vmem:[#allocation2 + $0x64] sm:$0xf] }
  0x11   :  { %340 = vmatpush.bf16.msra.mxu1 %v712_v9  ;;  %v640_v18 = vor.u32 %v794_v16, %v639_v15  ;;  %v810_v19 = vld [vmem:[#allocation2 + $0xe4] sm:$0xf0]  ;;  %v641_v21 = vld [vmem:[#allocation2 + $0x68] sm:$0xf0]  ;;  %353 = vmatpush.bf16.msra.mxu2 %v652_v13  ;;  %v809_v23 = vld [vmem:[#allocation2 + $0xe4] sm:$0xf] }
  0x12   :  { %366 = vmatpush.bf16.msra.mxu3 %v716_v14  ;;  %v704_v22 = vor.u32 %v810_v19, %v703_v17  ;;  %v705_v24 = vld [vmem:[#allocation2 + $0xe8] sm:$0xf0]  ;;  %v631_v25 = vld [vmem:[#allocation2 + $0x50] sm:$0xf]  ;;  %v792_v26 = vld [vmem:[#allocation2 + $0x54] sm:$0xf0]  ;;  %v644_v29 = vor.u32 %v793_v20, %v641_v21 }
  0x13   :  { %v695_v27 = vld [vmem:[#allocation2 + $0xd0] sm:$0xf]  ;;  %v808_v28 = vld [vmem:[#allocation2 + $0xd4] sm:$0xf0]  ;;  %v708_v30 = vor.u32 %v809_v23, %v705_v24  ;;  %v791_v31 = vld [vmem:[#allocation2 + $0x54] sm:$0xf]  ;;  %v632_v32 = vor.u32 %v792_v26, %v631_v25 }
  0x14   :  { %328 = vmatpush.bf16.msra.mxu0 %v640_v18  ;;  %v696_v33 = vor.u32 %v808_v28, %v695_v27  ;;  %v633_v34 = vld [vmem:[#allocation2 + $0x58] sm:$0xf0]  ;;  %v807_v35 = vld [vmem:[#allocation2 + $0xd4] sm:$0xf]  ;;  %v937_v38 = vmov 3   ;;  %s578_s22 = sshll.u32 %s1013_s7, 4  ;;  %s579_s22 = int_to_ptr.hbm [resolvable:$true] %s578_s22 }
  0x15   :  { %341 = vmatpush.bf16.msra.mxu1 %v704_v22  ;;  %v697_v36 = vld [vmem:[#allocation2 + $0xd8] sm:$0xf0]  ;;  %354 = vmatpush.bf16.msra.mxu2 %v644_v29  ;;  %v636_v39 = vor.u32 %v791_v31, %v633_v34  ;;  %v623_v41 = vld [vmem:[#allocation2 + $0x40] sm:$0xf]  ;;  %v790_v42 = vld [vmem:[#allocation2 + $0x44] sm:$0xf0] }
  0x16   :  { %841 = vset.pattern.permute.xlu0 %v936_v37  ;;  %843 = vset.pattern.permute.xlu1 %v937_v38  ;;  %v700_v40 = vor.u32 %v807_v35, %v697_v36  ;;  %v687_v43 = vld [vmem:[#allocation2 + $0xc0] sm:$0xf]  ;;  %v624_v44 = vor.u32 %v790_v42, %v623_v41  ;;  %v806_v45 = vld [vmem:[#allocation2 + $0xc4] sm:$0xf0]  ;;  %v789_v46 = vld [vmem:[#allocation2 + $0x44] sm:$0xf] }
  0x17   :  { %84 = vperm.xlu0 %841, %v59_v2   ;;  %112 = vperm.xlu1 %843, %v59_v2   ;;  %v625_v47 = vld [vmem:[#allocation2 + $0x48] sm:$0xf0]  ;;  %v688_v48 = vor.u32 %v806_v45, %v687_v43  ;;  %v805_v50 = vld [vmem:[#allocation2 + $0xc4] sm:$0xf]  ;;  %v615_v53 = vld [vmem:[#allocation2 + $0x30] sm:$0xf] }
  0x18   :  { %367 = vmatpush.bf16.msra.mxu3 %v708_v30  ;;  %329 = vmatpush.bf16.msra.mxu0 %v632_v32  ;;  %v628_v49 = vor.u32 %v789_v46, %v625_v47  ;;  %v689_v51 = vld [vmem:[#allocation2 + $0xc8] sm:$0xf0]  ;;  %v788_v54 = vld [vmem:[#allocation2 + $0x34] sm:$0xf0]  ;;  %v679_v55 = vld [vmem:[#allocation2 + $0xb0] sm:$0xf] }
  0x19   :  { %342 = vmatpush.bf16.msra.mxu1 %v696_v33  ;;  %355 = vmatpush.bf16.msra.mxu2 %v636_v39  ;;  %v692_v52 = vor.u32 %v805_v50, %v689_v51  ;;  %v616_v56 = vor.u32 %v788_v54, %v615_v53  ;;  %v804_v57 = vld [vmem:[#allocation2 + $0xb4] sm:$0xf0]  ;;  %v787_v58 = vld [vmem:[#allocation2 + $0x34] sm:$0xf]  ;;  %v617_v60 = vld [vmem:[#allocation2 + $0x38] sm:$0xf0] }
  0x1a   :  { %v680_v59 = vor.u32 %v804_v57, %v679_v55  ;;  %v803_v61 = vld [vmem:[#allocation2 + $0xb4] sm:$0xf]  ;;  %v681_v62 = vld [vmem:[#allocation2 + $0xb8] sm:$0xf0]  ;;  %v620_v63 = vor.u32 %v787_v58, %v617_v60  ;;  %v607_v1 = vld [vmem:[#allocation2 + $0x20] sm:$0xf] }
  0x1b   :  { %v684_v0 = vor.u32 %v803_v61, %v681_v62  ;;  %v786_v2 = vld [vmem:[#allocation2 + $0x24] sm:$0xf0]  ;;  %v671_v4 = vld [vmem:[#allocation2 + $0xa0] sm:$0xf]  ;;  %v785_v6 = vld [vmem:[#allocation2 + $0x24] sm:$0xf] }
  0x1c   :  { %368 = vmatpush.bf16.msra.mxu3 %v700_v40  ;;  %330 = vmatpush.bf16.msra.mxu0 %v624_v44  ;;  %v608_v3 = vor.u32 %v786_v2, %v607_v1  ;;  %v802_v5 = vld [vmem:[#allocation2 + $0xa4] sm:$0xf0]  ;;  %v609_v8 = vld [vmem:[#allocation2 + $0x28] sm:$0xf0]  ;;  %v801_v9 = vld [vmem:[#allocation2 + $0xa4] sm:$0xf] }
  0x1d   :  { %343 = vmatpush.bf16.msra.mxu1 %v688_v48  ;;  %356 = vmatpush.bf16.msra.mxu2 %v628_v49  ;;  %v672_v7 = vor.u32 %v802_v5, %v671_v4  ;;  %v673_v10 = vld [vmem:[#allocation2 + $0xa8] sm:$0xf0]  ;;  %v612_v11 = vor.u32 %v785_v6, %v609_v8  ;;  %v599_v13 = vld [vmem:[#allocation2 + $0x10] sm:$0xf]  ;;  %v784_v14 = vld [vmem:[#allocation2 + $0x14] sm:$0xf0] }
  0x1e   :  { %v676_v12 = vor.u32 %v801_v9, %v673_v10  ;;  %v663_v15 = vld [vmem:[#allocation2 + $0x90] sm:$0xf]  ;;  %v600_v16 = vor.u32 %v784_v14, %v599_v13  ;;  %v800_v17 = vld [vmem:[#allocation2 + $0x94] sm:$0xf0]  ;;  %v783_v18 = vld [vmem:[#allocation2 + $0x14] sm:$0xf] }
  0x1f   :  { %844 = vset.pattern.permute.xlu0 %v937_v38  ;;  %v664_v19 = vor.u32 %v800_v17, %v663_v15  ;;  %v601_v20 = vld [vmem:[#allocation2 + $0x18] sm:$0xf0]  ;;  %v799_v21 = vld [vmem:[#allocation2 + $0x94] sm:$0xf]  ;;  %v591_v25 = vld [vmem:[#allocation2] sm:$0xf] }
  0x20   :  { %369 = vmatpush.bf16.msra.mxu3 %v692_v52  ;;  %331 = vmatpush.bf16.msra.mxu0 %v616_v56  ;;  %v665_v22 = vld [vmem:[#allocation2 + $0x98] sm:$0xf0]  ;;  %v604_v23 = vor.u32 %v783_v18, %v601_v20  ;;  %v782_v26 = vld [vmem:[#allocation2 + $0x4] sm:$0xf0]  ;;  %v655_v27 = vld [vmem:[#allocation2 + $0x80] sm:$0xf] }
  0x21   :  { %344 = vmatpush.bf16.msra.mxu1 %v680_v59  ;;  %357 = vmatpush.bf16.msra.mxu2 %v620_v63  ;;  %v668_v24 = vor.u32 %v799_v21, %v665_v22  ;;  %v592_v28 = vor.u32 %v782_v26, %v591_v25  ;;  %v798_v29 = vld [vmem:[#allocation2 + $0x84] sm:$0xf0]  ;;  %v781_v30 = vld [vmem:[#allocation2 + $0x4] sm:$0xf]  ;;  %v593_v31 = vld [vmem:[#allocation2 + $0x8] sm:$0xf0] }
  0x22   :  { %v656_v32 = vor.u32 %v798_v29, %v655_v27  ;;  %v596_v33 = vor.u32 %v781_v30, %v593_v31  ;;  %v797_v34 = vld [vmem:[#allocation2 + $0x84] sm:$0xf]  ;;  %v657_v35 = vld [vmem:[#allocation2 + $0x88] sm:$0xf0]  ;;  %v820_v37 = vld [vmem:[#allocation5 + $0x38] sm:$0xff]  ;;  %vm569_vm5 = vcmask 64512  }
  0x23   :  { %v660_v36 = vor.u32 %v797_v34, %v657_v35  ;;  %v828_v38 = vld [vmem:[#allocation5 + $0x78] sm:$0xff]  ;;  %v819_v39 = vld [vmem:[#allocation5 + $0x30] sm:$0xff]  ;;  %v60_v41 = vld [vmem:[%s1007_s1] sm:$0xff] }
  0x24   :  { %370 = vmatpush.bf16.msra.mxu3 %v684_v0  ;;  %332 = vmatpush.bf16.msra.mxu0 %v608_v3  ;;  %v827_v40 = vld [vmem:[#allocation5 + $0x70] sm:$0xff]  ;;  %v818_v42 = vld [vmem:[#allocation5 + $0x28] sm:$0xff]  ;;  %v73_v43 = vperm.slane %v60_v41, 0  ;;  %v74_v44 = vperm.slane %v60_v41, 4  ;;  %v61_v48 = vld [vmem:[%s1008_s2] sm:$0x3] }
  0x25   :  { %345 = vmatpush.bf16.msra.mxu1 %v672_v7  ;;  %358 = vmatpush.bf16.msra.mxu2 %v612_v11  ;;  %v826_v45 = vld [vmem:[#allocation5 + $0x68] sm:$0xff]  ;;  %v817_v49 = vld [vmem:[#allocation5 + $0x20] sm:$0xff]  ;;  %v87_v52 = vperm.slane %v60_v41, 1  ;;  %v88_v53 = vperm.slane %v60_v41, 5  ;;  %v101_v55 = vperm.slane %v60_v41, 2  ;;  %v102_v56 = vperm.slane %v60_v41, 6 }
  0x26   :  { %v77_v50 = vperm.slane %v73_v43, 0  ;;  %v78_v51 = vperm.slane %v74_v44, 0  ;;  %v825_v54 = vld [vmem:[#allocation5 + $0x60] sm:$0xff]  ;;  %v115_v57 = vperm.slane %v60_v41, 3  ;;  %v116_v58 = vperm.slane %v60_v41, 7  ;;  %v816_v61 = vld [vmem:[#allocation5 + $0x18] sm:$0xff] }
  0x27   :  { %v63_v59 = vperm.slane %v61_v48, 0  ;;  %v64_v60 = vperm.slane %v61_v48, 1  ;;  %v91_v0 = vperm.slane %v87_v52, 1  ;;  %v92_v1 = vperm.slane %v88_v53, 1  ;;  %v815_v8 = vld [vmem:[#allocation5 + $0x10] sm:$0xff]  ;;  %v824_v27 = vld [vmem:[#allocation5 + $0x58] sm:$0xff] }
  0x28   :  { %371 = vmatpush.bf16.msra.mxu3 %v676_v12  ;;  %333 = vmatpush.bf16.msra.mxu0 %v600_v16  ;;  %v105_v2 = vperm.slane %v101_v55, 2  ;;  %v106_v3 = vperm.slane %v102_v56, 2  ;;  %v119_v4 = vperm.slane %v115_v57, 3  ;;  %v120_v5 = vperm.slane %v116_v58, 3  ;;  %v823_v29 = vld [vmem:[#allocation5 + $0x50] sm:$0xff]  ;;  %v813_v30 = vld [vmem:[#allocation5] sm:$0xff] }
  0x29   :  { %346 = vmatpush.bf16.msra.mxu1 %v664_v19  ;;  %359 = vmatpush.bf16.msra.mxu2 %v604_v23  ;;  %v822_v31 = vld [vmem:[#allocation5 + $0x48] sm:$0xff]  ;;  %v541_v52 = vlaneseq }
  0x2b   :  { %v542_v55 = vand.u32 127, %v541_v52 }
  0x2c   :  { %372 = vmatpush.bf16.msra.mxu3 %v668_v24  ;;  %334 = vmatpush.bf16.msra.mxu0 %v592_v28  ;;  %v814_v28 = vld [vmem:[#allocation5 + $0x8] sm:$0xff] }
  0x2d   :  { %347 = vmatpush.bf16.msra.mxu1 %v656_v32  ;;  %360 = vmatpush.bf16.msra.mxu2 %v596_v33  ;;  %v821_v32 = vld [vmem:[#allocation5 + $0x40] sm:$0xff]  ;;  %vm543_vm0 = vcmp.lt.s32.totalorder %v542_v55, 2 }
  0x2e   :  { %v161_v33 = vld [vmem:[%s1010_s4] sm:$0x3] }
  0x2f   :  { %v163_v34 = vperm.slane %v161_v33, 0 }
  0x30   :  { %373 = vmatpush.bf16.msra.mxu3 %v660_v36  ;;  %515 = vmatpush.bf16.msrb.mxu0 %v820_v37 }
  0x31   :  { %528 = vmatpush.bf16.msrb.mxu1 %v828_v38 }
  0x34   :  { %516 = vmatpush.bf16.msrb.mxu0 %v819_v39  ;;  %v164_v39 = vperm.slane %v161_v33, 1 }
  0x35   :  { %529 = vmatpush.bf16.msrb.mxu1 %v827_v40 }
  0x38   :  { %517 = vmatpush.bf16.msrb.mxu0 %v818_v42 }
  0x39   :  { %530 = vmatpush.bf16.msrb.mxu1 %v826_v45 }
  0x3c   :  { %518 = vmatpush.bf16.msrb.mxu0 %v817_v49 }
  0x3d   :  { %531 = vmatpush.bf16.msrb.mxu1 %v825_v54  ;;  %v845_v54 = vld [vmem:[%s1012_s6] ss:$0 sm:$0xff]  ;;  %s938_s6 = smov [#allocation7]  }
  0x3e   :  { %s576_s19 = sshll.u32 %s938_s6, 4  ;;  %s577_s19 = int_to_ptr.vmem [resolvable:$true] %s576_s19 }
  0x40   :  { %519 = vmatpush.bf16.msrb.mxu0 %v816_v61 }
  0x41   :  { %532 = vmatpush.bf16.msrb.mxu1 %v824_v27 }
  0x44   :  { %520 = vmatpush.bf16.msrb.mxu0 %v815_v8 }
  0x45   :  { %533 = vmatpush.bf16.msrb.mxu1 %v823_v29 }
  0x48   :  { %521 = vmatpush.bf16.msrb.mxu0 %v814_v28 }
  0x49   :  { %534 = vmatpush.bf16.msrb.mxu1 %v822_v31 }
  0x4c   :  { %522 = vmatpush.bf16.msrb.mxu0 %v813_v30 }
  0x4d   :  { %535 = vmatpush.bf16.msrb.mxu1 %v821_v32 }
  0x80   :  { %v70_v46 = vpop.permute.xlu0 %69  ;;  %v99_v47 = vpop.permute.xlu1 %98 }
  0x81   :  { %v79_v62 = vmul.f32 %v77_v50, %v70_v46  ;;  %v80_v63 = vmul.f32 %v78_v51, %v70_v46  ;;  %v107_v13 = vmul.f32 %v105_v2, %v99_v47  ;;  %v108_v14 = vmul.f32 %v106_v3, %v99_v47 }
  0x83   :  { %v81_v9 = vadd.f32 %v79_v62, %v63_v59  ;;  %v82_v10 = vadd.f32 %v80_v63, %v64_v60 }
  0x89   :  { %v85_v6 = vpop.permute.xlu0 %84  ;;  %v113_v7 = vpop.permute.xlu1 %112 }
  0x8a   :  { %v93_v11 = vmul.f32 %v91_v0, %v85_v6  ;;  %v94_v12 = vmul.f32 %v92_v1, %v85_v6  ;;  %v121_v17 = vmul.f32 %v119_v4, %v113_v7  ;;  %v122_v18 = vmul.f32 %v120_v5, %v113_v7 }
  0x8c   :  { %v95_v15 = vadd.f32 %v93_v11, %v81_v9  ;;  %v96_v16 = vadd.f32 %v94_v12, %v82_v10 }
  0x8e   :  { %v109_v19 = vadd.f32 %v107_v13, %v95_v15  ;;  %v110_v20 = vadd.f32 %v108_v14, %v96_v16 }
  0x90   :  { %v123_v21 = vadd.f32 %v121_v17, %v109_v19  ;;  %v124_v22 = vadd.f32 %v122_v18, %v110_v20 }
  0x92   :  { %v125_v23 = vmax.f32 %v123_v21, 0.0  ;;  %v126_v24 = vmax.f32 %v124_v22, 0.0 }
  0x94   :  { %v127_v25 = vpack.c.bf16 %v125_v23, %v125_v23  ;;  %v128_v26 = vpack.c.bf16 %v126_v24, %v126_v24 }
  0x96   :  { %335 = vmatmul.bf16.vlgmr.msra.gmra.mxu0 %v127_v25  ;;  %348 = vmatmul.bf16.vlgmr.msra.gmra.mxu1 %v128_v26 }
  0x97   :  { %361 = vmatmul.bf16.vlgmr.msra.gmra.mxu2 %v127_v25  ;;  %374 = vmatmul.bf16.vlgmr.msra.gmra.mxu3 %v128_v26 }
 0x113   :  { %v336_v35 = vpop.f32.mrf.mxu0  ;;  %v349_v36 = vpop.f32.mrf.mxu1 }
 0x114   :  { %v337_v37 = vadd.f32 %v336_v35, %v163_v34 }
 0x116   :  { %v350_v38 = vadd.f32 %v349_v36, %v337_v37 }
 0x118   :  { %v379_v40 = vmax.f32 %v350_v38, 0.0 }
 0x11a   :  { %v381_v41 = vpack.c.bf16 %v379_v40, %v379_v40  ;;  %v362_v42 = vpop.f32.mrf.mxu2  ;;  %v375_v43 = vpop.f32.mrf.mxu3 }
 0x11b   :  { %v363_v44 = vadd.f32 %v362_v42, %v164_v39  ;;  %v338_v45 = vpop.f32.mrf.mxu0  ;;  %v351_v46 = vpop.f32.mrf.mxu1 }
 0x11c   :  { %523 = vmatmul.bf16.vlgmr.msrb.gmra.mxu0 %v381_v41 }
 0x11d   :  { %v376_v47 = vadd.f32 %v375_v43, %v363_v44 }
 0x11f   :  { %v380_v48 = vmax.f32 %v376_v47, 0.0 }
 0x121   :  { %v382_v49 = vpack.c.bf16 %v380_v48, %v380_v48 }
 0x122   :  { %v364_v50 = vpop.f32.mrf.mxu2  ;;  %v377_v51 = vpop.f32.mrf.mxu3 }
 0x123   :  { %536 = vmatmul.bf16.vlgmr.msrb.gmra.mxu1 %v382_v49 }
 0x199   :  { %v524_v53 = vpop.f32.mrf.mxu0 }
 0x19a   :  { %v525_v56 = vadd.f32 %v845_v54, %v524_v53 }
 0x1a0   :  { %v537_v57 = vpop.f32.mrf.mxu1 }
 0x1a1   :  { %v538_v58 = vadd.f32 %v537_v57, %v525_v56  ;;  %v526_v59 = vpop.f32.mrf.mxu0 }
 0x1a3   :  { %v544_v60 = vsel %vm543_vm0, %v538_v58, -inf }
 0x1a4   :  { %545 = vmax.xlane.f32.xlu2 %v544_v60 }
 0x1a8   :  { %v539_v61 = vpop.f32.mrf.mxu1 }
 0x217   :  { %v546_v62 = vpop.xlane.xlu2 %545 }
 0x218   :  { %v547_v63 = vsub.f32 %v544_v60, %v546_v62 }
 0x21a   :  { %v548_v0 = vmul.f32 1.442695, %v547_v63 }
 0x21c   :  { %846 = vpow2.f32 %v548_v0 }
 0x222   :  { %v847_v1 = vpop.eup %846 }
 0x223   :  { %v550_v2 = vsel %vm543_vm0, %v847_v1, 0.0 }
 0x224   :  { %551 = vadd.xlane.f32.xlu2 %v550_v2 }
 0x297   :  { %v552_v3 = vpop.xlane.xlu2 %551 }
 0x298   :  { %848 = vrcp.f32 %v552_v3  ;;  %v564_v7 = vand.u32 2147483648, %v552_v3  ;;  %v562_v9 = vand.u32 2147483647, %v552_v3  ;;  %vm558_vm2 = vweird.f32 %v552_v3 }
 0x29a   :  { %v565_v11 = vor.u32 1.1754944e-38, %v564_v7  ;;  %vm563_vm4 = vcmp.eq.f32.partialorder %v562_v9, 8.507059e+37 }
 0x29e   :  { %v849_v4 = vpop.eup %848 }
 0x29f   :  { %v554_v5 = vmul.f32 %v849_v4, %v552_v3  ;;  %vm559_vm1 = vweird.f32 %v849_v4 }
 0x2a0   :  { %vm560_vm3 = vmor %vm558_vm2, %vm559_vm1 }
 0x2a1   :  { %v555_v6 = vsub.f32 1.0, %v554_v5 }
 0x2a3   :  { %v556_v8 = vmul.f32 %v849_v4, %v555_v6 }
 0x2a5   :  { %v557_v10 = vadd.f32 %v849_v4, %v556_v8 }
 0x2a7   :  { %v561_v12 = vsel %vm560_vm3, %v849_v4, %v557_v10 }
 0x2a8   :  { %v566_v13 = vsel %vm563_vm4, %v565_v11, %v561_v12 }
 0x2a9   :  { %v567_v14 = vmul.f32 %v566_v13, %v550_v2 }
 0x2ab   :  { %v568_v15 = vsel %vm543_vm0, %v567_v14, %v538_v58 }
 0x2ac   :  { %570 = vst.msk [vmem:[#allocation7] sm:$0xff] %vm569_vm5, %v568_v15 }
 0x2ad   :  { %581 = dma.vmem_to_hbm [thread:$0]  %s577_s19, 128, %s579_s22, [#allocation4]  }
 0x2ae   :  { %926 = dma.done.wait [#allocation4], 128  }
 0x2af   :  { %927 = vsyncadd [#allocation4], 4294967168 }
 0x2b0   :  { %586 = vsyncpa [#allocation3], 1 }
 0x2b1   :  { %587 = vsyncpa [#allocation6], 1 }
 0x2b2   :  { %588 = vsyncpa [#allocation4], 1 }

</bundles_post_ra>
